<compile_context>
chip_gen: v6e
topology: v6e:2x2x1
jax: 0.10.0
libtpu: 0.0.40
codegen_flags: <defaults>
</compile_context>

<pallas_src>
import jax
import jax.numpy as jnp
from jax.experimental import pallas as pl
from jax.experimental.pallas import tpu as pltpu


def logreg_kernel(x_ref, w_ref, b_ref, o_ref):
    # x_ref: (TB, F) VMEM  -- streamed batch tile
    # w_ref: (1, F)  VMEM  -- weight row, resident across all grid steps
    # b_ref: (1, 1)  SMEM  -- bias scalar
    # o_ref: (1, TB) VMEM  -- lane-dense output tile (logits along lanes)
    x = x_ref[...]
    w = w_ref[...]
    # N=1 GEMV: VPU broadcast-multiply + cross-lane reduction (XLU); keeps the
    # MXU out of the critical path and feeds the lane-dense output directly.
    z = jnp.sum(x * w, axis=-1) + b_ref[0, 0]          # (TB,) float32
    o_ref[0, :] = jax.nn.sigmoid(z).astype(o_ref.dtype)


def logistic_regression(x, weight, bias, *, tb=512):
    """sigmoid(x @ weight.T + bias), matching the PyTorch module.

    x:      [B, F] float32
    weight: [1, F] float32  (PyTorch nn.Linear layout)
    bias:   [1]    float32
    returns [B, 1] float32
    """
    B, F = x.shape

    # Tile size selection:
    #   - If the whole batch fits in one tile, use a single full-array block
    #     (no (8, 128) divisibility constraint applies to full-extent blocks).
    #   - Otherwise TB must be a multiple of 128: it is the sublane dim of the
    #     x block (needs %8) and the lane dim of the (1, TB) output block
    #     (needs %128).  512 is a good default on all of v5e/v6e/v7x.
    if B <= tb:
        tb = B
    else:
        assert tb % 128 == 0, "tb must be a multiple of 128 when B > tb"

    grid = (pl.cdiv(B, tb),)
    b2d = bias.reshape(1, 1)

    out = pl.pallas_call(
        logreg_kernel,
        out_shape=jax.ShapeDtypeStruct((1, B), x.dtype),  # lane-dense logits row
        grid=grid,
        in_specs=[
            # x streams tile-by-tile -> double-buffered DMA overlaps compute.
            pl.BlockSpec((tb, F), lambda i: (i, 0)),
            # weight: constant block index -> fetched once, stays resident.
            pl.BlockSpec((1, F), lambda i: (0, 0)),
            # bias: scalar in SMEM (no VMEM tile / broadcast DMA needed).
            pl.BlockSpec((1, 1), lambda i: (0, 0),
                         memory_space=pltpu.MemorySpace.SMEM),
        ],
        out_specs=pl.BlockSpec((1, tb), lambda i: (0, i)),
        compiler_params=pltpu.CompilerParams(
            # Batch tiles are independent -> shard across both TCs on v7x.
            dimension_semantics=("parallel",)),
    )(x, weight, b2d)

    # (1, B) -> (B, 1): row-major order identical, so this reshape is free.
    return out.reshape(B, 1)


if __name__ == "__main__":
    def reference(x, weight, bias):
        return jax.nn.sigmoid(x @ weight.T + bias)

    key = jax.random.PRNGKey(0)

    # Case 1: small shapes consistent with the tutorial module
    # (n_input_features = 32, batch = 8) -> single-block path.
    F1, B1 = 32, 8
    k1, k2, k3, key = jax.random.split(key, 4)
    x1 = jax.random.normal(k1, (B1, F1), dtype=jnp.float32)
    bound1 = 1.0 / jnp.sqrt(jnp.float32(F1))
    w1 = jax.random.uniform(k2, (1, F1), minval=-bound1, maxval=bound1,
                            dtype=jnp.float32)
    b1 = jax.random.uniform(k3, (1,), minval=-bound1, maxval=bound1,
                            dtype=jnp.float32)
    y1 = jax.block_until_ready(logistic_regression(x1, w1, b1))
    assert y1.shape == (B1, 1)
    assert jnp.allclose(y1, reference(x1, w1, b1), atol=1e-5), "case 1 mismatch"

    # Case 2: batch larger than the tile and not a multiple of it
    # -> exercises the pipelined, multi-tile, padded-last-block path.
    F2, B2 = 256, 1000
    k1, k2, k3, key = jax.random.split(key, 4)
    x2 = jax.random.normal(k1, (B2, F2), dtype=jnp.float32)
    bound2 = 1.0 / jnp.sqrt(jnp.float32(F2))
    w2 = jax.random.uniform(k2, (1, F2), minval=-bound2, maxval=bound2,
                            dtype=jnp.float32)
    b2 = jax.random.uniform(k3, (1,), minval=-bound2, maxval=bound2,
                            dtype=jnp.float32)
    y2 = jax.block_until_ready(logistic_regression(x2, w2, b2, tb=512))
    assert y2.shape == (B2, 1)
    assert jnp.allclose(y2, reference(x2, w2, b2), atol=1e-5), "case 2 mismatch"

    print("KERNEL_OK")
</pallas_src>

<mosaic_0001>
module attributes {stable_mosaic.version = 11 : i64} {
  func.func @logreg_kernel(%arg0: i32, %arg1: memref<8x32xf32, #tpu.memory_space<vmem>>, %arg2: memref<1x32xf32, #tpu.memory_space<vmem>>, %arg3: memref<1x1xf32, #tpu.memory_space<smem>>, %arg4: memref<1x8xf32, #tpu.memory_space<vmem>>) attributes {dimension_semantics = [#tpu.dimension_semantics<parallel>], iteration_bounds = array<i64: 1>, scalar_prefetch = 0 : i64, scratch_operands = 0 : i64, tpu.core_type = #tpu.core_type<tc>, window_params = [{transform_indices = @transform_0, window_bounds = array<i64: 8, 32>}, {pipeline_mode = #tpu.pipeline_mode<synchronous>, transform_indices = @transform_1, window_bounds = array<i64: 1, 32>}, {transform_indices = @transform_2, window_bounds = array<i64: 1, 1>}, {transform_indices = @transform_3, window_bounds = array<i64: 1, 8>}]} {
    %c0 = arith.constant 0 : index
    %c0_0 = arith.constant 0 : index
    %0 = vector.load %arg1[%c0, %c0_0] : memref<8x32xf32, #tpu.memory_space<vmem>>, vector<8x32xf32>
    %c0_1 = arith.constant 0 : index
    %c0_2 = arith.constant 0 : index
    %1 = vector.load %arg2[%c0_1, %c0_2] : memref<1x32xf32, #tpu.memory_space<vmem>>, vector<1x32xf32>
    %2 = vector.broadcast %1 : vector<1x32xf32> to vector<8x32xf32>
    %3 = arith.mulf %0, %2 : vector<8x32xf32>
    %cst = arith.constant dense<0.000000e+00> : vector<8xf32>
    %4 = vector.multi_reduction <add>, %3, %cst [1] : vector<8x32xf32> to vector<8xf32>
    %c0_3 = arith.constant 0 : index
    %c0_4 = arith.constant 0 : index
    %5 = memref.load %arg3[%c0_3, %c0_4] : memref<1x1xf32, #tpu.memory_space<smem>>
    %6 = vector.broadcast %5 : f32 to vector<8xf32>
    %7 = arith.addf %4, %6 : vector<8xf32>
    %8 = arith.negf %7 : vector<8xf32>
    %9 = math.exp %8 : vector<8xf32>
    %cst_5 = arith.constant 1.000000e+00 : f32
    %10 = vector.broadcast %cst_5 : f32 to vector<8xf32>
    %11 = arith.addf %10, %9 : vector<8xf32>
    %12 = arith.divf %10, %11 : vector<8xf32>
    %c0_6 = arith.constant 0 : index
    %c0_7 = arith.constant 0 : index
    %13 = vector.load %arg4[%c0_6, %c0_7] : memref<1x8xf32, #tpu.memory_space<vmem>>, vector<1x8xf32>
    %14 = vector.shape_cast %13 : vector<1x8xf32> to vector<8xf32>
    %15 = vector.shape_cast %12 : vector<8xf32> to vector<1x8xf32>
    tpu.vector_store %arg4[%c0_6, %c0_7], %15 {strides = array<i32>} : memref<1x8xf32, #tpu.memory_space<vmem>>, vector<1x8xf32>,
    return
  }
  func.func @transform_0(%arg0: i32) -> (i32, i32) {
    %c0_i32 = arith.constant 0 : i32
    %c0_i32_0 = arith.constant 0 : i32
    return %arg0, %c0_i32 : i32, i32
  }
  func.func @transform_1(%arg0: i32) -> (i32, i32) {
    %c0_i32 = arith.constant 0 : i32
    %c0_i32_0 = arith.constant 0 : i32
    %c0_i32_1 = arith.constant 0 : i32
    return %c0_i32, %c0_i32_0 : i32, i32
  }
  func.func @transform_2(%arg0: i32) -> (i32, i32) {
    %c0_i32 = arith.constant 0 : i32
    %c0_i32_0 = arith.constant 0 : i32
    %c0_i32_1 = arith.constant 0 : i32
    return %c0_i32, %c0_i32_0 : i32, i32
  }
  func.func @transform_3(%arg0: i32) -> (i32, i32) {
    %c0_i32 = arith.constant 0 : i32
    %c0_i32_0 = arith.constant 0 : i32
    return %c0_i32, %arg0 : i32, i32
  }
}

</mosaic_0001>

<bundles_post_ra>
// kernel: tpu_custom_call.1
= control target key start
LH: loop header
LB: loop body
LE: loop exit
PB: predicated region body
PF: predicated region fallthrough
CT: control target
= control target key end

     0   :  { %9 = vsyncpa [#allocation4], 0  ;;  %s161_s0 = inlined_call_operand.hbm [shape: f32[8,32], index: 0, kind: input, shape index: {}]   ;;  %s162_s1 = inlined_call_operand.vmem [shape: f32[1,32], index: 1, kind: input, shape index: {}]   ;;  %s163_s2 = inlined_call_operand.<no memory space> [shape: f32[1,1], index: 2, kind: input, shape index: {}]   ;;  %s164_s3 = inlined_call_operand.hbm [shape: f32[1,8], index: 3, kind: output, shape index: {}]  }
   0x1   :  { %10 = vsyncpa [#allocation5], 0  ;;  %s127_s12 = smov [#allocation3]  }
   0x2   :  { %s17_s13 = sshll.u32 %s127_s12, 4  ;;  %s18_s13 = int_to_ptr.vmem [resolvable:$true] %s17_s13 }
   0x3   :  { %s91_s14 = scalar_lea.vmem %s18_s13, 128  ;;  %p96_p1 = scmp.lt.s32.totalorder %s18_s13, %s18_s13 }
   0x4   :  { %p92_p0 = scmp.ne.s32.totalorder %s18_s13, %s91_s14  ;;  %p97_p2 = scmp.lt.s32.totalorder %s91_s14, %s91_s14 }
   0x6   :  { %p98_p3 = por %p97_p2, %p96_p1 }
   0x8   :  { %p99_p4 = pnand %p98_p3, %p92_p0 }
   0xa   :  { %102 = shalt.err (!%p99_p4)
}
   0xb   :  { %20 = dma.hbm_to_vmem [thread:$0]  %s161_s0, 128, %s18_s13, [#allocation4]  }
   0xc   :  { %123 = dma.done.wait [#allocation4], 128  }
   0xd   :  { %124 = vsyncadd [#allocation4], 4294967168  ;;  %v28_v0 = vld [vmem:[#allocation3] sm:$0xff]  ;;  %vm37_vm0 = vcmask 261120   ;;  %v42_v4 = vstv %s163_s2  ;;  %v51_v10 = vlaneseq  ;;  %s128_s0 = smov [#allocation6]   ;;  %vm58_vm1 = vcmask 57344  }
   0xe   :  { %v75_v1 = vld [vmem:[%s162_s1] ss:$0 sm:$0xff]  ;;  %s66_s1 = sshll.u32 %s128_s0, 4  ;;  %s67_s1 = int_to_ptr.vmem [resolvable:$true] %s66_s1 }
   0xf   :  { %v36_v2 = vmul.f32 %v75_v1, %v28_v0  ;;  %v52_v11 = vand.u32 127, %v51_v10  ;;  %v54_v12 = vshrl.u32 %v51_v10, 7  ;;  %s103_s21 = scalar_lea.vmem %s67_s1, 16  ;;  %s107_s2 = scalar_lea.vmem %s67_s1, 32 }
  0x10   :  { %p104_p5 = scmp.ne.s32.totalorder %s67_s1, %s103_s21  ;;  %p108_p6 = scmp.lt.s32.totalorder %s67_s1, %s67_s1 }
  0x11   :  { %v38_v3 = vsel %vm37_vm0, %v36_v2, 0.0  ;;  %v55_v13 = vsub.s32 %v52_v11, %v54_v12  ;;  %p109_p7 = scmp.lt.s32.totalorder %s107_s2, %s103_s21 }
  0x12   :  { %39 = vadd.xlane.f32.xlu0 %v38_v3 }
  0x13   :  { %p110_p8 = por %p109_p7, %p108_p6 }
  0x15   :  { %p111_p9 = pnand %p110_p8, %p104_p5 }
  0x9b   :  { %v40_v5 = vpop.xlane.xlu0 %39 }
  0x9c   :  { %v43_v6 = vadd.f32 %v42_v4, %v40_v5 }
  0x9e   :  { %v76_v7 = vmul.f32 -1.442695, %v43_v6 }
  0xa0   :  { %79 = vpow2.f32 %v76_v7 }
  0xad   :  { %v80_v8 = vpop.eup %79 }
  0xae   :  { %v47_v9 = vadd.f32 1.0, %v80_v8 }
  0xb0   :  { %81 = vrcp.f32 %v47_v9 }
  0xbd   :  { %v82_v14 = vpop.eup %81 }
  0xbe   :  { %v56_v15 = vrot.slane %v82_v14, %v55_v13 }
  0xc0   :  { %59 = vst.msk [vmem:[#allocation6] sm:$0x1] %vm58_vm1, %v56_v15 }
  0xc1   :  { %114 = shalt.err (!%p111_p9)
}
  0xc2   :  { %69 = dma.vmem_to_hbm [thread:$0]  %s67_s1, 16, %s164_s3, [#allocation5]  }
  0xc3   :  { %125 = dma.done.wait [#allocation5], 16  }
  0xc4   :  { %126 = vsyncadd [#allocation5], 4294967280 }
  0xc5   :  { %73 = vsyncpa [#allocation4], 1 }
  0xc6   :  { %74 = vsyncpa [#allocation5], 1 }

</bundles_post_ra>
